<compile_context>
chip_gen: v7x
topology: tpu7x:2x2x1
jax: 0.10.0
libtpu: 0.0.40
codegen_flags: <defaults>
</compile_context>

<pallas_src>
import functools

import jax
import jax.numpy as jnp
from jax.experimental import pallas as pl
from jax.experimental.pallas import tpu as pltpu


def _round_up(x, m):
    return ((x + m - 1) // m) * m


# ----------------------------------------------------------------------------
# Fully fused MLP kernel: chain of (matmul -> bias -> activation) in one body.
# ----------------------------------------------------------------------------
def _mlp_fused_kernel(*refs, activations, valid_out_dims):
    # refs = (x_ref, w0_ref, b0_ref, w1_ref, b1_ref, ..., o_ref)
    x_ref = refs[0]
    o_ref = refs[-1]
    wb_refs = refs[1:-1]

    h = x_ref[...].astype(jnp.float32)  # (TN, D0_pad)
    for li, act in enumerate(activations):
        w = wb_refs[2 * li][...]        # (Din_pad, Dout_pad) bf16
        b = wb_refs[2 * li + 1][...]    # (1, Dout_pad) f32 (broadcast on VPU)
        # MXU: bf16 operands, f32 accumulation.
        y = jnp.dot(h.astype(jnp.bfloat16), w,
                    preferred_element_type=jnp.float32) + b

        d_valid = valid_out_dims[li]
        d_pad = w.shape[1]

        if act in ("softmax", "logsoftmax"):
            if d_valid < d_pad:
                # Finite sentinel (not -inf) so padded lanes never create NaNs
                # in any downstream matmul against zero weight rows.
                lane = jax.lax.broadcasted_iota(jnp.int32, y.shape, 1)
                y = jnp.where(lane < d_valid, y, -1e30)
            y_max = jnp.max(y, axis=-1, keepdims=True)
            z = y - y_max
            e = jnp.exp(z)
            s = jnp.sum(e, axis=-1, keepdims=True)
            if act == "softmax":
                # EUP approximate reciprocal: divide rides the otherwise-idle
                # EUP slot after the exp.
                y = e * pl.reciprocal(s, approx=True)
            else:
                y = z - jnp.log(s)
        elif act == "relu":
            y = jnp.maximum(y, 0.0)
        elif act == "tanh":
            y = jnp.tanh(y)
        elif act == "sigmoid":
            y = jax.nn.sigmoid(y)
        elif act == "lrelu":
            y = jnp.where(y >= 0.0, y, 0.01 * y)
        elif act in ("none", None):
            pass
        else:
            raise ValueError(f"unknown activation {act!r}")

        h = y

    o_ref[...] = h.astype(o_ref.dtype)


# ----------------------------------------------------------------------------
# Wrapper: grid / specs / VMEM budgeting. Parameters arrive already padded.
# ----------------------------------------------------------------------------
def mlp_forward(x, padded_wb, nonlins, layer_out_dims, in_pads, out_pads,
                *, max_row_tile=1024, vmem_target_bytes=40 << 20):
    """Run the fused MLP.

    x:              (N, D_in) f32
    padded_wb:      flat list [w0, b0, w1, b1, ...]; w bf16 (Din_pad, Dout_pad),
                    b f32 (1, Dout_pad), zero-padded beyond the valid dims.
    nonlins:        activation names, one per layer.
    layer_out_dims: true (unpadded) output dim per layer.
    in_pads/out_pads: padded feature dims per layer.
    """
    n, d_in = x.shape
    num_layers = len(nonlins)
    in_pad0 = in_pads[0]
    out_pad_last = out_pads[-1]
    max_feat_pad = max(list(in_pads) + list(out_pads))

    # --- VMEM budget -> row tile TN (single-buffered bf16 weights + f32 biases)
    weight_bytes = sum(in_pads[li] * out_pads[li] * 2 + out_pads[li] * 4
                       for li in range(num_layers))
    # Double-buffered f32 input/output row tiles + a few live f32 intermediates.
    per_row_bytes = 2 * (in_pad0 + out_pad_last) * 4 + 3 * max_feat_pad * 4
    avail = max(vmem_target_bytes - weight_bytes, 8 * per_row_bytes)
    tn = min(max_row_tile,
             _round_up(n, 8),
             max(8, (avail // per_row_bytes) // 8 * 8))
    n_pad = _round_up(n, tn)

    # --- input padding only when actually ragged ------------------------------
    if n_pad != n or in_pad0 != d_in:
        x_in = jnp.zeros((n_pad, in_pad0), jnp.float32).at[:n, :d_in].set(x)
    else:
        x_in = x.astype(jnp.float32)

    # --- specs ----------------------------------------------------------------
    in_specs = [pl.BlockSpec((tn, in_pad0), lambda i: (i, 0))]
    for li in range(num_layers):
        # Grid-invariant blocks: single-buffer them (no useless double-buffer).
        in_specs.append(pl.BlockSpec((in_pads[li], out_pads[li]),
                                     lambda i: (0, 0),
                                     pipeline_mode=pl.Buffered(1)))
        in_specs.append(pl.BlockSpec((1, out_pads[li]),
                                     lambda i: (0, 0),
                                     pipeline_mode=pl.Buffered(1)))
    out_spec = pl.BlockSpec((tn, out_pad_last), lambda i: (i, 0))

    kernel = functools.partial(
        _mlp_fused_kernel,
        activations=tuple(nonlins),
        valid_out_dims=tuple(layer_out_dims),
    )

    # --- scheduler hints -------------------------------------------------------
    flops = 2 * n_pad * sum(in_pads[li] * out_pads[li] for li in range(num_layers))
    transcendental_acts = {"softmax", "logsoftmax", "tanh", "sigmoid"}
    transcendentals = n_pad * sum(out_pads[li] for li in range(num_layers)
                                  if nonlins[li] in transcendental_acts)
    bytes_accessed = (n_pad * in_pad0 * 4) + weight_bytes + (n_pad * out_pad_last * 4)

    vmem_needed = weight_bytes + tn * per_row_bytes
    # Explicit limit (scoped default is only 16/32 MiB); cap at 56 MiB so the
    # same budget fits v7x's 64 MiB/TC as well as v5e/v6e's 128 MiB.
    vmem_limit = int(min(max(vmem_needed + (8 << 20), 32 << 20), 56 << 20))

    out_padded = pl.pallas_call(
        kernel,
        out_shape=jax.ShapeDtypeStruct((n_pad, out_pad_last), jnp.float32),
        grid=(n_pad // tn,),
        in_specs=in_specs,
        out_specs=out_spec,
        compiler_params=pltpu.CompilerParams(
            dimension_semantics=("parallel",),
            vmem_limit_bytes=vmem_limit,
        ),
        cost_estimate=pl.CostEstimate(
            flops=flops,
            transcendentals=transcendentals,
            bytes_accessed=bytes_accessed,
        ),
    )(x_in, *padded_wb)

    d_out = layer_out_dims[-1]
    if n_pad == n and out_pad_last == d_out:
        return out_padded
    return out_padded[:n, :d_out]


# ----------------------------------------------------------------------------
# MLP wrapper (parameter setup / padding hoisted out of the forward path)
# ----------------------------------------------------------------------------
class MLP:
    def __init__(self, in_dim, dims, nonlins, key):
        assert len(nonlins) == len(dims)
        self.in_dim = in_dim
        self.out_dim = dims[-1]
        self.nonlins = list(nonlins)
        self.layer_out_dims = list(dims)

        all_dims = [in_dim] + list(dims)
        self.in_pads = [_round_up(d, 128) for d in all_dims[:-1]]
        self.out_pads = [_round_up(d, 128) for d in all_dims[1:]]

        self.params = []      # un-padded f32 (reference / export)
        self.padded_wb = []   # padded bf16 weights + f32 biases (kernel inputs)
        for i in range(len(dims)):
            fan_in, fan_out = all_dims[i], all_dims[i + 1]
            key, wk, bk = jax.random.split(key, 3)
            bound = 1.0 / jnp.sqrt(fan_in)
            # PyTorch nn.Linear-style uniform init; stored (D_in, D_out)
            # (transposed relative to PyTorch's (out, in) storage).
            w = jax.random.uniform(wk, (fan_in, fan_out), jnp.float32, -bound, bound)
            b = jax.random.uniform(bk, (fan_out,), jnp.float32, -bound, bound)
            self.params.append((w, b))

            # Zero padding beyond valid rows/cols is the correctness invariant
            # that keeps padded lanes from polluting valid outputs downstream.
            w_pad = (jnp.zeros((self.in_pads[i], self.out_pads[i]), jnp.float32)
                     .at[:fan_in, :fan_out].set(w)).astype(jnp.bfloat16)
            b_pad = jnp.zeros((1, self.out_pads[i]), jnp.float32).at[0, :fan_out].set(b)
            self.padded_wb += [w_pad, b_pad]

    def __call__(self, x):
        return mlp_forward(x, self.padded_wb, self.nonlins,
                           self.layer_out_dims, self.in_pads, self.out_pads)

    def reference(self, x):
        """Pure-JAX f32 reference for correctness checking."""
        for (w, b), nonlin in zip(self.params, self.nonlins):
            y = x @ w + b
            if nonlin == "relu":
                y = jnp.maximum(y, 0.0)
            elif nonlin == "tanh":
                y = jnp.tanh(y)
            elif nonlin == "sigmoid":
                y = jax.nn.sigmoid(y)
            elif nonlin == "lrelu":
                y = jnp.where(y >= 0.0, y, 0.01 * y)
            elif nonlin == "softmax":
                y = jax.nn.softmax(y, axis=-1)
            elif nonlin == "logsoftmax":
                y = jax.nn.log_softmax(y, axis=-1)
            x = y
        return x


if __name__ == "__main__":
    key = jax.random.PRNGKey(0)
    key, xkey, pkey = jax.random.split(key, 3)

    # Small MLP: in_dim=16, hidden dims [32, 32, 8], nonlins after each layer.
    in_dim = 16
    dims = [32, 32, 8]
    nonlins = ["relu", "tanh", "softmax"]   # softmax over features (PyTorch dim=1)

    mlp = MLP(in_dim, dims, nonlins, pkey)

    n = 2
    x = jax.random.normal(xkey, (n, in_dim), jnp.float32)

    out = mlp(x)
    out = jax.block_until_ready(out)

    ref = mlp.reference(x)
    assert out.shape == (n, dims[-1]), out.shape
    # bf16 MXU operands (f32 accumulate) + approx reciprocal => loosened tolerance.
    assert jnp.allclose(out, ref, atol=2e-2, rtol=2e-2), "mismatch vs reference"

    print("KERNEL_OK")
</pallas_src>

<mosaic_0001>
module attributes {stable_mosaic.version = 11 : i64} {
  func.func @_mlp_fused_kernel(%arg0: i32, %arg1: memref<8x128xf32, #tpu.memory_space<vmem>>, %arg2: memref<128x128xbf16, #tpu.memory_space<vmem>>, %arg3: memref<1x128xf32, #tpu.memory_space<vmem>>, %arg4: memref<128x128xbf16, #tpu.memory_space<vmem>>, %arg5: memref<1x128xf32, #tpu.memory_space<vmem>>, %arg6: memref<128x128xbf16, #tpu.memory_space<vmem>>, %arg7: memref<1x128xf32, #tpu.memory_space<vmem>>, %arg8: memref<8x128xf32, #tpu.memory_space<vmem>>) attributes {dimension_semantics = [#tpu.dimension_semantics<parallel>], iteration_bounds = array<i64: 1>, scalar_prefetch = 0 : i64, scratch_operands = 0 : i64, tpu.core_type = #tpu.core_type<tc>, window_params = [{transform_indices = @transform_0, window_bounds = array<i64: 8, 128>}, {pipeline_mode = #tpu.pipeline_mode<synchronous>, transform_indices = @transform_1, window_bounds = array<i64: 128, 128>}, {pipeline_mode = #tpu.pipeline_mode<synchronous>, transform_indices = @transform_2, window_bounds = array<i64: 1, 128>}, {pipeline_mode = #tpu.pipeline_mode<synchronous>, transform_indices = @transform_3, window_bounds = array<i64: 128, 128>}, {pipeline_mode = #tpu.pipeline_mode<synchronous>, transform_indices = @transform_4, window_bounds = array<i64: 1, 128>}, {pipeline_mode = #tpu.pipeline_mode<synchronous>, transform_indices = @transform_5, window_bounds = array<i64: 128, 128>}, {pipeline_mode = #tpu.pipeline_mode<synchronous>, transform_indices = @transform_6, window_bounds = array<i64: 1, 128>}, {transform_indices = @transform_7, window_bounds = array<i64: 8, 128>}]} {
    %c0 = arith.constant 0 : index
    %c0_0 = arith.constant 0 : index
    %0 = vector.load %arg1[%c0, %c0_0] : memref<8x128xf32, #tpu.memory_space<vmem>>, vector<8x128xf32>
    %c0_1 = arith.constant 0 : index
    %c0_2 = arith.constant 0 : index
    %1 = vector.load %arg2[%c0_1, %c0_2] : memref<128x128xbf16, #tpu.memory_space<vmem>>, vector<128x128xbf16>
    %c0_3 = arith.constant 0 : index
    %c0_4 = arith.constant 0 : index
    %2 = vector.load %arg3[%c0_3, %c0_4] : memref<1x128xf32, #tpu.memory_space<vmem>>, vector<1x128xf32>
    %3 = arith.truncf %0 : vector<8x128xf32> to vector<8x128xbf16>
    %cst = arith.constant dense<0.000000e+00> : vector<8x128xf32>
    %4 = tpu.matmul %3, %1, %cst {dimension_numbers = #tpu.dot_dimension_numbers<[1], [0], [0], [1], [0, 0, 1, 1], [], []>} : vector<8x128xbf16>, vector<128x128xbf16>, vector<8x128xf32> -> vector<8x128xf32>
    %5 = vector.broadcast %2 : vector<1x128xf32> to vector<8x128xf32>
    %6 = arith.addf %4, %5 : vector<8x128xf32>
    %cst_5 = arith.constant 0.000000e+00 : f32
    %7 = vector.broadcast %cst_5 : f32 to vector<8x128xf32>
    %8 = arith.maximumf %6, %7 : vector<8x128xf32>
    %c0_6 = arith.constant 0 : index
    %c0_7 = arith.constant 0 : index
    %9 = vector.load %arg4[%c0_6, %c0_7] : memref<128x128xbf16, #tpu.memory_space<vmem>>, vector<128x128xbf16>
    %c0_8 = arith.constant 0 : index
    %c0_9 = arith.constant 0 : index
    %10 = vector.load %arg5[%c0_8, %c0_9] : memref<1x128xf32, #tpu.memory_space<vmem>>, vector<1x128xf32>
    %11 = arith.truncf %8 : vector<8x128xf32> to vector<8x128xbf16>
    %cst_10 = arith.constant dense<0.000000e+00> : vector<8x128xf32>
    %12 = tpu.matmul %11, %9, %cst_10 {dimension_numbers = #tpu.dot_dimension_numbers<[1], [0], [0], [1], [0, 0, 1, 1], [], []>} : vector<8x128xbf16>, vector<128x128xbf16>, vector<8x128xf32> -> vector<8x128xf32>
    %13 = vector.broadcast %10 : vector<1x128xf32> to vector<8x128xf32>
    %14 = arith.addf %12, %13 : vector<8x128xf32>
    %15 = math.tanh %14 : vector<8x128xf32>
    %c0_11 = arith.constant 0 : index
    %c0_12 = arith.constant 0 : index
    %16 = vector.load %arg6[%c0_11, %c0_12] : memref<128x128xbf16, #tpu.memory_space<vmem>>, vector<128x128xbf16>
    %c0_13 = arith.constant 0 : index
    %c0_14 = arith.constant 0 : index
    %17 = vector.load %arg7[%c0_13, %c0_14] : memref<1x128xf32, #tpu.memory_space<vmem>>, vector<1x128xf32>
    %18 = arith.truncf %15 : vector<8x128xf32> to vector<8x128xbf16>
    %cst_15 = arith.constant dense<0.000000e+00> : vector<8x128xf32>
    %19 = tpu.matmul %18, %16, %cst_15 {dimension_numbers = #tpu.dot_dimension_numbers<[1], [0], [0], [1], [0, 0, 1, 1], [], []>} : vector<8x128xbf16>, vector<128x128xbf16>, vector<8x128xf32> -> vector<8x128xf32>
    %20 = vector.broadcast %17 : vector<1x128xf32> to vector<8x128xf32>
    %21 = arith.addf %19, %20 : vector<8x128xf32>
    %22 = tpu.iota {dimensions = array<i32: 1>} : vector<8x128xi32>
    %c8_i32 = arith.constant 8 : i32
    %23 = vector.broadcast %c8_i32 : i32 to vector<8x128xi32>
    %24 = arith.cmpi slt, %22, %23 : vector<8x128xi32>
    %cst_16 = arith.constant -1.000000e+30 : f32
    %25 = vector.broadcast %cst_16 : f32 to vector<8x128xf32>
    %26 = arith.select %24, %21, %25 : vector<8x128xi1>, vector<8x128xf32>
    %cst_17 = arith.constant dense<0xFF800000> : vector<8xf32>
    %27 = vector.multi_reduction <maximumf>, %26, %cst_17 [1] : vector<8x128xf32> to vector<8xf32>
    %28 = vector.shape_cast %27 : vector<8xf32> to vector<8x1xf32>
    %29 = vector.broadcast %28 : vector<8x1xf32> to vector<8x128xf32>
    %30 = arith.subf %26, %29 : vector<8x128xf32>
    %31 = math.exp %30 : vector<8x128xf32>
    %cst_18 = arith.constant dense<0.000000e+00> : vector<8xf32>
    %32 = vector.multi_reduction <add>, %31, %cst_18 [1] : vector<8x128xf32> to vector<8xf32>
    %33 = vector.shape_cast %32 : vector<8xf32> to vector<8x1xf32>
    %34 = tpu.reciprocal %33 {approx = true} : vector<8x1xf32> -> vector<8x1xf32>
    %35 = vector.broadcast %34 : vector<8x1xf32> to vector<8x128xf32>
    %36 = arith.mulf %31, %35 : vector<8x128xf32>
    %c0_19 = arith.constant 0 : index
    %c0_20 = arith.constant 0 : index
    %37 = vector.load %arg8[%c0_19, %c0_20] : memref<8x128xf32, #tpu.memory_space<vmem>>, vector<8x128xf32>
    tpu.vector_store %arg8[%c0_19, %c0_20], %36 {strides = array<i32>} : memref<8x128xf32, #tpu.memory_space<vmem>>, vector<8x128xf32>,
    return
  }
  func.func @transform_0(%arg0: i32) -> (i32, i32) {
    %c0_i32 = arith.constant 0 : i32
    %c0_i32_0 = arith.constant 0 : i32
    return %arg0, %c0_i32 : i32, i32
  }
  func.func @transform_1(%arg0: i32) -> (i32, i32) {
    %c0_i32 = arith.constant 0 : i32
    %c0_i32_0 = arith.constant 0 : i32
    %c0_i32_1 = arith.constant 0 : i32
    return %c0_i32, %c0_i32_0 : i32, i32
  }
  func.func @transform_2(%arg0: i32) -> (i32, i32) {
    %c0_i32 = arith.constant 0 : i32
    %c0_i32_0 = arith.constant 0 : i32
    %c0_i32_1 = arith.constant 0 : i32
    return %c0_i32, %c0_i32_0 : i32, i32
  }
  func.func @transform_3(%arg0: i32) -> (i32, i32) {
    %c0_i32 = arith.constant 0 : i32
    %c0_i32_0 = arith.constant 0 : i32
    %c0_i32_1 = arith.constant 0 : i32
    return %c0_i32, %c0_i32_0 : i32, i32
  }
  func.func @transform_4(%arg0: i32) -> (i32, i32) {
    %c0_i32 = arith.constant 0 : i32
    %c0_i32_0 = arith.constant 0 : i32
    %c0_i32_1 = arith.constant 0 : i32
    return %c0_i32, %c0_i32_0 : i32, i32
  }
  func.func @transform_5(%arg0: i32) -> (i32, i32) {
    %c0_i32 = arith.constant 0 : i32
    %c0_i32_0 = arith.constant 0 : i32
    %c0_i32_1 = arith.constant 0 : i32
    return %c0_i32, %c0_i32_0 : i32, i32
  }
  func.func @transform_6(%arg0: i32) -> (i32, i32) {
    %c0_i32 = arith.constant 0 : i32
    %c0_i32_0 = arith.constant 0 : i32
    %c0_i32_1 = arith.constant 0 : i32
    return %c0_i32, %c0_i32_0 : i32, i32
  }
  func.func @transform_7(%arg0: i32) -> (i32, i32) {
    %c0_i32 = arith.constant 0 : i32
    %c0_i32_0 = arith.constant 0 : i32
    return %arg0, %c0_i32 : i32, i32
  }
}

</mosaic_0001>

<bundles_post_ra>
// kernel: tpu_custom_call.1
= control target key start
LH: loop header
LB: loop body
LE: loop exit
PB: predicated region body
PF: predicated region fallthrough
CT: control target
= control target key end

     0   :  { %12 = vsyncpa [#allocation3], 0  ;;  %s879_s0 = inlined_call_operand.hbm [shape: f32[8,128], index: 0, kind: input, shape index: {}]   ;;  %s880_s1 = inlined_call_operand.hbm [shape: bf16[128,128], index: 1, kind: input, shape index: {}]   ;;  %s881_s2 = inlined_call_operand.vmem [shape: f32[1,128], index: 2, kind: input, shape index: {}]   ;;  %s882_s3 = inlined_call_operand.hbm [shape: bf16[128,128], index: 3, kind: input, shape index: {}]   ;;  %s883_s4 = inlined_call_operand.vmem [shape: f32[1,128], index: 4, kind: input, shape index: {}]   ;;  %s884_s5 = inlined_call_operand.hbm [shape: bf16[128,128], index: 5, kind: input, shape index: {}]   ;;  %s885_s6 = inlined_call_operand.vmem [shape: f32[1,128], index: 6, kind: input, shape index: {}]   ;;  %s886_s7 = inlined_call_operand.hbm [shape: f32[8,128], index: 7, kind: output, shape index: {}]  }
   0x1   :  { %13 = vsyncpa [#allocation6], 0 }
   0x2   :  { %14 = vsyncpa [#allocation9], 0 }
   0x3   :  { %15 = vsyncpa [#allocation4], 0  ;;  %s722_s24 = smov [#allocation5]   ;;  %s604_s28 = scalar_lea.hbm %s880_s1, 1024 }
   0x4   :  { %s31_s25 = sshll.u32 %s722_s24, 4  ;;  %p605_p0 = scmp.ne.s32.totalorder %s880_s1, %s604_s28  ;;  %s32_s25 = int_to_ptr.vmem [resolvable:$true] %s31_s25 }
   0x5   :  { %p608_p1 = scmp.lt.u32.totalorder %s604_s28, %s880_s1 }
   0x7   :  { %p610_p2 = pnand %p608_p1, %p605_p0 }
   0x9   :  { %613 = shalt.err (!%p610_p2)
}
   0xa   :  { %s614_s10 = scalar_lea.vmem %s32_s25, 1024  ;;  %p619_p4 = scmp.lt.s32.totalorder %s32_s25, %s32_s25 }
   0xb   :  { %p615_p3 = scmp.ne.s32.totalorder %s32_s25, %s614_s10  ;;  %p620_p5 = scmp.lt.s32.totalorder %s614_s10, %s614_s10 }
   0xd   :  { %p621_p6 = por %p620_p5, %p619_p4 }
   0xf   :  { %p622_p7 = pnand %p621_p6, %p615_p3 }
  0x11   :  { %625 = shalt.err (!%p622_p7)
}
  0x12   :  { %s723_s11 = smov 64   ;;  %s724_s12 = smov 4  }
  0x13   :  { %37 = dma.hbm_to_vmem [thread:$0]  %s880_s1, 1024, %s32_s25, [#allocation6], %s723_s11, %s723_s11, %s724_s12  }
  0x14   :  { %s725_s15 = smov [#allocation2]   ;;  %s726_s17 = smov [#allocation7]  }
  0x15   :  { %s22_s16 = sshll.u32 %s725_s15, 4  ;;  %s45_s18 = sshll.u32 %s726_s17, 4  ;;  %s23_s16 = int_to_ptr.vmem [resolvable:$true] %s22_s16  ;;  %s46_s18 = int_to_ptr.vmem [resolvable:$true] %s45_s18 }
  0x16   :  { %s626_s21 = scalar_lea.hbm %s879_s0, 128 }
  0x17   :  { %p627_p8 = scmp.ne.s32.totalorder %s879_s0, %s626_s21  ;;  %p630_p9 = scmp.lt.u32.totalorder %s626_s21, %s879_s0 }
  0x19   :  { %p632_p10 = pnand %p630_p9, %p627_p8 }
  0x1b   :  { %635 = shalt.err (!%p632_p10)
}
  0x1c   :  { %s636_s1 = scalar_lea.vmem %s23_s16, 128  ;;  %p641_p12 = scmp.lt.s32.totalorder %s23_s16, %s23_s16 }
  0x1d   :  { %p637_p11 = scmp.ne.s32.totalorder %s23_s16, %s636_s1  ;;  %p642_p13 = scmp.lt.s32.totalorder %s636_s1, %s636_s1 }
  0x1f   :  { %p643_p0 = por %p642_p13, %p641_p12 }
  0x21   :  { %p644_p1 = pnand %p643_p0, %p637_p11 }
  0x23   :  { %647 = shalt.err (!%p644_p1)
}
  0x24   :  { %25 = dma.hbm_to_vmem [thread:$0]  %s879_s0, 128, %s23_s16, [#allocation3]  }
  0x25   :  { %s648_s30 = scalar_lea.hbm %s882_s3, 1024 }
  0x26   :  { %p649_p2 = scmp.ne.s32.totalorder %s882_s3, %s648_s30  ;;  %p652_p3 = scmp.lt.u32.totalorder %s648_s30, %s882_s3 }
  0x28   :  { %p654_p4 = pnand %p652_p3, %p649_p2 }
  0x2a   :  { %657 = shalt.err (!%p654_p4)
}
  0x2b   :  { %s658_s14 = scalar_lea.vmem %s46_s18, 1024  ;;  %p663_p6 = scmp.lt.s32.totalorder %s46_s18, %s46_s18 }
  0x2c   :  { %p659_p5 = scmp.ne.s32.totalorder %s46_s18, %s658_s14  ;;  %p664_p7 = scmp.lt.s32.totalorder %s658_s14, %s658_s14 }
  0x2e   :  { %p665_p8 = por %p664_p7, %p663_p6 }
  0x30   :  { %p666_p9 = pnand %p665_p8, %p659_p5 }
  0x32   :  { %669 = shalt.err (!%p666_p9)
}
  0x33   :  { %51 = dma.hbm_to_vmem [thread:$0]  %s882_s3, 1024, %s46_s18, [#allocation6], %s723_s11, %s723_s11, %s724_s12  }
  0x34   :  { %s727_s16 = smov [#allocation8]   ;;  %s670_s21 = scalar_lea.hbm %s884_s5, 1024 }
  0x35   :  { %s59_s17 = sshll.u32 %s727_s16, 4  ;;  %p671_p10 = scmp.ne.s32.totalorder %s884_s5, %s670_s21  ;;  %s60_s17 = int_to_ptr.vmem [resolvable:$true] %s59_s17 }
  0x36   :  { %p674_p11 = scmp.lt.u32.totalorder %s670_s21, %s884_s5 }
  0x38   :  { %p676_p12 = pnand %p674_p11, %p671_p10 }
  0x3a   :  { %679 = shalt.err (!%p676_p12)
}
  0x3b   :  { %s680_s1 = scalar_lea.vmem %s60_s17, 1024  ;;  %p685_p0 = scmp.lt.s32.totalorder %s60_s17, %s60_s17 }
  0x3c   :  { %p681_p13 = scmp.ne.s32.totalorder %s60_s17, %s680_s1  ;;  %p686_p1 = scmp.lt.s32.totalorder %s680_s1, %s680_s1 }
  0x3e   :  { %p687_p2 = por %p686_p1, %p685_p0 }
  0x40   :  { %p688_p3 = pnand %p687_p2, %p681_p13 }
  0x42   :  { %691 = shalt.err (!%p688_p3)
}
  0x43   :  { %65 = dma.hbm_to_vmem [thread:$0]  %s884_s5, 1024, %s60_s17, [#allocation9], %s723_s11, %s723_s11, %s724_s12  }
  0x44   :  { %714 = dma.done.wait [#allocation3], 128  }
  0x45   :  { %715 = vsyncadd [#allocation3], 4294967168 }
  0x46   :  { %716 = dma.done.wait [#allocation6], 2048  }
  0x47   :  { %717 = vsyncadd [#allocation6], 4294965248 }
  0x48   :  { %718 = dma.done.wait [#allocation9], 1024  }
  0x49   :  { %719 = vsyncadd [#allocation9], 4294966272  ;;  %v728_v0 = vmov 0.0   ;;  %vm729_vm0 = vmmov 0   ;;  %v574_v1 = vld [vmem:[#allocation5] sm:$0xff]   ;;  %v575_v2 = vld [vmem:[#allocation5 + $0x8] sm:$0xff]   ;;  %v420_v43 = vlaneseq }
  0x4a   :  { %505 = vmatprep.subr.bf16.mxu0 %v728_v0  ;;  %521 = vmatprep.mubr.msk.bf16.mxu0 %vm729_vm0, %v728_v0  ;;  %v576_v3 = vld [vmem:[#allocation5 + $0x10] sm:$0xff]   ;;  %v582_v4 = vld [vmem:[#allocation7] sm:$0xff]   ;;  %v577_v5 = vld [vmem:[#allocation5 + $0x18] sm:$0xff]  }
  0x4b   :  { %525 = vmatprep.subr.bf16.mxu1 %v728_v0  ;;  %541 = vmatprep.mubr.msk.bf16.mxu1 %vm729_vm0, %v728_v0  ;;  %v583_v6 = vld [vmem:[#allocation7 + $0x8] sm:$0xff]   ;;  %v578_v7 = vld [vmem:[#allocation5 + $0x20] sm:$0xff]   ;;  %v584_v8 = vld [vmem:[#allocation7 + $0x10] sm:$0xff]   ;;  %v421_v44 = vand.u32 127, %v420_v43 }
  0x4c   :  { %506 = vmatpush3.bf16.msra.mxu0 %v574_v1  ;;  %526 = vmatpush3.bf16.msra.mxu1 %v582_v4  ;;  %v579_v9 = vld [vmem:[#allocation5 + $0x28] sm:$0xff]   ;;  %v585_v10 = vld [vmem:[#allocation7 + $0x18] sm:$0xff]   ;;  %v580_v11 = vld [vmem:[#allocation5 + $0x30] sm:$0xff]  }
  0x4d   :  { %507 = vmatprep.subr.bf16.mxu0 %v728_v0  ;;  %527 = vmatprep.subr.bf16.mxu1 %v728_v0  ;;  %v586_v12 = vld [vmem:[#allocation7 + $0x20] sm:$0xff]   ;;  %v581_v13 = vld [vmem:[#allocation5 + $0x38] sm:$0xff]   ;;  %v587_v15 = vld [vmem:[#allocation7 + $0x28] sm:$0xff]   ;;  %vm422_vm1 = vcmp.lt.s32.totalorder %v421_v44, 8 }
  0x4e   :  { %v81_v14 = vld [vmem:[#allocation2] sm:$0xff]  ;;  %v588_v17 = vld [vmem:[#allocation7 + $0x30] sm:$0xff]   ;;  %v590_v19 = vld [vmem:[#allocation8] sm:$0xff]  }
  0x4f   :  { %v99_v16 = vpack.c.bf16 %v81_v14, %v81_v14  ;;  %v589_v18 = vld [vmem:[#allocation7 + $0x38] sm:$0xff]   ;;  %v591_v20 = vld [vmem:[#allocation8 + $0x8] sm:$0xff]   ;;  %v592_v21 = vld [vmem:[#allocation8 + $0x10] sm:$0xff]  }
  0x50   :  { %508 = vmatpush3.bf16.msra.mxu0 %v575_v2  ;;  %528 = vmatpush3.bf16.msra.mxu1 %v583_v6  ;;  %v593_v22 = vld [vmem:[#allocation8 + $0x18] sm:$0xff]   ;;  %v594_v31 = vld [vmem:[#allocation8 + $0x20] sm:$0xff]   ;;  %v595_v32 = vld [vmem:[#allocation8 + $0x28] sm:$0xff]  }
  0x51   :  { %509 = vmatprep.subr.bf16.mxu0 %v728_v0  ;;  %529 = vmatprep.subr.bf16.mxu1 %v728_v0  ;;  %v451_v23 = vld [vmem:[%s881_s2] ss:$0 sm:$0xff]  ;;  %v596_v33 = vld [vmem:[#allocation8 + $0x30] sm:$0xff]  }
  0x52   :  { %v597_v34 = vld [vmem:[#allocation8 + $0x38] sm:$0xff]  }
  0x53   :  { %v460_v35 = vld [vmem:[%s883_s4] ss:$0 sm:$0xff]  ;;  %s730_s4 = smov [#allocation10]  }
  0x54   :  { %510 = vmatpush3.bf16.msra.mxu0 %v576_v3  ;;  %530 = vmatpush3.bf16.msra.mxu1 %v584_v8  ;;  %v469_v45 = vld [vmem:[%s885_s6] ss:$0 sm:$0xff]  ;;  %s440_s28 = sshll.u32 %s730_s4, 4  ;;  %s441_s28 = int_to_ptr.vmem [resolvable:$true] %s440_s28 }
  0x55   :  { %511 = vmatprep.subr.bf16.mxu0 %v728_v0  ;;  %531 = vmatprep.subr.bf16.mxu1 %v728_v0  ;;  %s692_s6 = scalar_lea.vmem %s441_s28, 128  ;;  %p697_p5 = scmp.lt.s32.totalorder %s441_s28, %s441_s28 }
  0x56   :  { %p693_p4 = scmp.ne.s32.totalorder %s441_s28, %s692_s6  ;;  %p698_p6 = scmp.lt.s32.totalorder %s692_s6, %s692_s6 }
  0x58   :  { %512 = vmatpush3.bf16.msra.mxu0 %v577_v5  ;;  %532 = vmatpush3.bf16.msra.mxu1 %v585_v10  ;;  %p699_p7 = por %p698_p6, %p697_p5 }
  0x59   :  { %513 = vmatprep.subr.bf16.mxu0 %v728_v0  ;;  %533 = vmatprep.subr.bf16.mxu1 %v728_v0 }
  0x5a   :  { %p700_p8 = pnand %p699_p7, %p693_p4 }
  0x5c   :  { %514 = vmatpush3.bf16.msra.mxu0 %v578_v7  ;;  %534 = vmatpush3.bf16.msra.mxu1 %v586_v12 }
  0x5d   :  { %515 = vmatprep.subr.bf16.mxu0 %v728_v0  ;;  %535 = vmatprep.subr.bf16.mxu1 %v728_v0 }
  0x60   :  { %516 = vmatpush3.bf16.msra.mxu0 %v579_v9  ;;  %536 = vmatpush3.bf16.msra.mxu1 %v587_v15 }
  0x61   :  { %517 = vmatprep.subr.bf16.mxu0 %v728_v0  ;;  %537 = vmatprep.subr.bf16.mxu1 %v728_v0 }
  0x64   :  { %518 = vmatpush3.bf16.msra.mxu0 %v580_v11  ;;  %538 = vmatpush3.bf16.msra.mxu1 %v588_v17 }
  0x65   :  { %519 = vmatprep.subr.bf16.mxu0 %v728_v0  ;;  %539 = vmatprep.subr.bf16.mxu1 %v728_v0 }
  0x68   :  { %520 = vmatpush3.bf16.msra.mxu0 %v581_v13  ;;  %540 = vmatpush3.bf16.msra.mxu1 %v589_v18 }
  0x69   :  { %545 = vmatprep.subr.bf16.mxu0 %v728_v0 }
  0x6b   :  { %522 = vmatmul.mubr.bf16.vlgmr.msra.gmra.mrb[0].mxu0 %v99_v16 }
  0x6c   :  { %561 = vmatprep.mubr.msk.bf16.mxu0 %vm729_vm0, %v728_v0  ;;  %546 = vmatpush3.bf16.msra.mxu0 %v590_v19 }
  0x6d   :  { %547 = vmatprep.subr.bf16.mxu0 %v728_v0 }
  0x70   :  { %548 = vmatpush3.bf16.msra.mxu0 %v591_v20 }
  0x71   :  { %549 = vmatprep.subr.bf16.mxu0 %v728_v0 }
  0x74   :  { %550 = vmatpush3.bf16.msra.mxu0 %v592_v21 }
  0x75   :  { %551 = vmatprep.subr.bf16.mxu0 %v728_v0 }
  0x78   :  { %552 = vmatpush3.bf16.msra.mxu0 %v593_v22 }
  0x79   :  { %553 = vmatprep.subr.bf16.mxu0 %v728_v0 }
  0x7c   :  { %554 = vmatpush3.bf16.msra.mxu0 %v594_v31 }
  0x7d   :  { %555 = vmatprep.subr.bf16.mxu0 %v728_v0 }
  0x80   :  { %556 = vmatpush3.bf16.msra.mxu0 %v595_v32 }
  0x81   :  { %557 = vmatprep.subr.bf16.mxu0 %v728_v0 }
  0x84   :  { %558 = vmatpush3.bf16.msra.mxu0 %v596_v33 }
  0x85   :  { %559 = vmatprep.subr.bf16.mxu0 %v728_v0 }
  0x88   :  { %560 = vmatpush3.bf16.msra.mxu0 %v597_v34 }
 0x13e   :  { %v188_v24 = vpop.f32.mrb[0].mxu0 }
 0x13f   :  { %v189_v25 = vadd.f32 %v451_v23, %v188_v24  ;;  %v523_v26 = vpop.f32.mrb[1].mxu0 }
 0x140   :  { %v191_v27 = vpop.f32.mrb[2].mxu0 }
 0x141   :  { %v194_v28 = vmax.f32 %v189_v25, 0.0  ;;  %v524_v29 = vpop.f32.mrb[3].mxu0 }
 0x143   :  { %v212_v30 = vpack.c.bf16 %v194_v28, %v194_v28 }
 0x145   :  { %542 = vmatmul.mubr.bf16.vlgmr.msra.gmra.mrb[0].mxu1 %v212_v30 }
 0x218   :  { %v301_v36 = vpop.f32.mrb[0].mxu1 }
 0x219   :  { %v302_v37 = vadd.f32 %v460_v35, %v301_v36  ;;  %v543_v38 = vpop.f32.mrb[1].mxu1 }
 0x21a   :  { %v304_v39 = vpop.f32.mrb[2].mxu1 }
 0x21b   :  { %598 = vtanh.f32 %v302_v37  ;;  %v544_v40 = vpop.f32.mrb[3].mxu1 }
 0x225   :  { %v599_v41 = vpop.eup %598 }
 0x226   :  { %v325_v42 = vpack.c.bf16 %v599_v41, %v599_v41 }
 0x228   :  { %562 = vmatmul.mubr.bf16.vlgmr.msra.gmra.mrb[4].mxu0 %v325_v42 }
 0x2fb   :  { %v414_v46 = vpop.f32.mrb[4].mxu0 }
 0x2fc   :  { %v415_v47 = vadd.f32 %v469_v45, %v414_v46  ;;  %v563_v48 = vpop.f32.mrb[5].mxu0 }
 0x2fd   :  { %v417_v49 = vpop.f32.mrb[6].mxu0 }
 0x2fe   :  { %v564_v50 = vpop.f32.mrb[7].mxu0  ;;  %v423_v51 = vsel %vm422_vm1, %v415_v47, -1e+30 }
 0x2ff   :  { %424 = vmax.xlane.f32.xlu0 %v423_v51 }
 0x38c   :  { %v425_v52 = vpop.xlane.xlu0 %424 }
 0x38d   :  { %v426_v53 = vsub.f32 %v423_v51, %v425_v52 }
 0x38f   :  { %v427_v54 = vmul.f32 1.442695, %v426_v53 }
 0x391   :  { %600 = vpow2.f32 %v427_v54 }
 0x39b   :  { %v601_v55 = vpop.eup %600 }
 0x39c   :  { %429 = vadd.xlane.f32.xlu0 %v601_v55 }
 0x429   :  { %v430_v56 = vpop.xlane.xlu0 %429 }
 0x42a   :  { %602 = vrcp.f32 %v430_v56 }
 0x434   :  { %v603_v57 = vpop.eup %602 }
 0x435   :  { %v432_v58 = vmul.f32 %v603_v57, %v601_v55 }
 0x437   :  { %433 = vst [vmem:[#allocation10] sm:$0xff] %v432_v58 }
 0x438   :  { %703 = shalt.err (!%p700_p8)
}
 0x439   :  { %s704_s8 = scalar_lea.hbm %s886_s7, 128 }
 0x43a   :  { %p705_p9 = scmp.ne.s32.totalorder %s886_s7, %s704_s8  ;;  %p708_p10 = scmp.lt.u32.totalorder %s704_s8, %s886_s7 }
 0x43c   :  { %p710_p11 = pnand %p708_p10, %p705_p9 }
 0x43e   :  { %713 = shalt.err (!%p710_p11)
}
 0x43f   :  { %443 = dma.vmem_to_hbm [thread:$0]  %s441_s28, 128, %s886_s7, [#allocation4]  }
 0x440   :  { %720 = dma.done.wait [#allocation4], 128  }
 0x441   :  { %721 = vsyncadd [#allocation4], 4294967168 }
 0x442   :  { %447 = vsyncpa [#allocation3], 1 }
 0x443   :  { %448 = vsyncpa [#allocation6], 1 }
 0x444   :  { %449 = vsyncpa [#allocation9], 1 }
 0x445   :  { %450 = vsyncpa [#allocation4], 1 }

</bundles_post_ra>
